<compile_context>
chip_gen: v6e
topology: v6e:2x2x1
jax: 0.10.0
libtpu: 0.0.40
codegen_flags: <defaults>
</compile_context>

<pallas_src>
import math
import jax
import jax.numpy as jnp
from jax import lax
from jax.experimental import pallas as pl
from jax.experimental.pallas import tpu as pltpu


# ----------------------------------------------------------------------------
# math helpers usable both inside Pallas kernels and in the reference
# ----------------------------------------------------------------------------
def _layernorm(x, w, b, eps=1e-5):
    mu = jnp.mean(x, axis=-1, keepdims=True)
    var = jnp.mean((x - mu) ** 2, axis=-1, keepdims=True)
    return (x - mu) * lax.rsqrt(var + eps) * w + b


def _erf_poly(x):
    # Abramowitz-Stegun 7.1.26 rational approximation of erf (f32-exact).
    a1, a2, a3, a4, a5 = 0.254829592, -0.284496736, 1.421413741, -1.453152027, 1.061405429
    p = 0.3275911
    s = jnp.sign(x)
    ax = jnp.abs(x)
    t = 1.0 / (1.0 + p * ax)
    poly = ((((a5 * t + a4) * t + a3) * t + a2) * t + a1) * t
    return s * (1.0 - poly * jnp.exp(-ax * ax))


def _gelu_exact(x):
    # nn.GELU() default (approximate='none'): 0.5*x*(1+erf(x/sqrt(2)))
    return 0.5 * x * (1.0 + _erf_poly(x * (1.0 / math.sqrt(2.0))))


# ----------------------------------------------------------------------------
# Pallas kernels
# ----------------------------------------------------------------------------
def linear_kernel(x_ref, w_ref, b_ref, o_ref):
    o_ref[...] = (
        jnp.dot(x_ref[...].astype(w_ref.dtype), w_ref[...],
                preferred_element_type=jnp.float32)
        + b_ref[...]
    )


def pallas_linear(x, w, b, block_m=256):
    """x: (M, K) f32, w: (K, N) bf16, b: (1, N) f32 -> (M, N) f32, tiled over M."""
    M, K = x.shape
    N = w.shape[1]
    bm = min(block_m, M)
    return pl.pallas_call(
        linear_kernel,
        grid=(pl.cdiv(M, bm),),
        in_specs=[
            pl.BlockSpec((bm, K), lambda i: (i, 0)),
            pl.BlockSpec((K, N), lambda i: (0, 0)),
            pl.BlockSpec((1, N), lambda i: (0, 0)),
        ],
        out_specs=pl.BlockSpec((bm, N), lambda i: (i, 0)),
        out_shape=jax.ShapeDtypeStruct((M, N), jnp.float32),
        compiler_params=pltpu.CompilerParams(
            dimension_semantics=("parallel",),
            vmem_limit_bytes=64 * 1024 * 1024),
    )(x, w, b)


def make_blocks_kernel(n_heads, d_k, t_pad, t_real):
    """Fused transformer stack: one grid step = one (batch, layer) pair.

    The output block (T, D) is resident in VMEM across the layer axis and acts
    as the carried activation; per-layer weights arrive via BlockSpec pipelining.
    """
    scale = 1.0 / math.sqrt(d_k)
    mask_keys = (t_pad != t_real)

    def kernel(x_ref, ln1w, ln1b, wq, bq, wk, bk, wv, bv, wo, bo,
               ln2w, ln2b, w1, b1, w2, b2, o_ref):
        f32, bf16 = jnp.float32, jnp.bfloat16
        H, T, D = n_heads, t_pad, n_heads * d_k
        layer = pl.program_id(1)

        @pl.when(layer == 0)
        def _():
            o_ref[...] = x_ref[...]          # load the embedded sequence once

        x = o_ref[...]                        # carried activation (T, D) f32

        # --- attention sub-block (head-batched, no lane slicing / concat) ---
        h = _layernorm(x, ln1w[...], ln1b[...])                   # f32
        hb = jnp.broadcast_to(h.astype(bf16), (H, T, D))          # (H, T, D)

        q = jnp.einsum("htd,hdk->htk", hb, wq[...],
                       preferred_element_type=f32) + bq[...]      # (H, T, dk)
        k = jnp.einsum("htd,hdk->htk", hb, wk[...],
                       preferred_element_type=f32) + bk[...]
        v = jnp.einsum("htd,hdk->htk", hb, wv[...],
                       preferred_element_type=f32) + bv[...]

        s = jnp.einsum("hqd,hkd->hqk", q.astype(bf16), k.astype(bf16),
                       preferred_element_type=f32) * scale        # (H, T, T)
        if mask_keys:
            key_id = lax.broadcasted_iota(jnp.int32, (1, 1, T), 2)
            s = jnp.where(key_id < t_real, s, -1e30)              # mask pad keys

        s = s - jnp.max(s, axis=-1, keepdims=True)                # stable softmax
        p = jnp.exp(s)
        p = p * pl.reciprocal(jnp.sum(p, axis=-1, keepdims=True), approx=True)

        o = jnp.einsum("hqk,hkd->hqd", p.astype(bf16), v.astype(bf16),
                       preferred_element_type=f32)                # (H, T, dk)
        attn = jnp.einsum("htk,hkd->htd", o.astype(bf16), wo[...],
                          preferred_element_type=f32)             # (H, T, D)
        attn = jnp.sum(attn, axis=0) + bo[...]                    # fold heads
        x = x + attn

        # --- feed-forward sub-block ---
        h2 = _layernorm(x, ln2w[...], ln2b[...])
        f = jnp.dot(h2.astype(bf16), w1[...], preferred_element_type=f32) + b1[...]
        f = _gelu_exact(f)
        f = jnp.dot(f.astype(bf16), w2[...], preferred_element_type=f32) + b2[...]
        o_ref[...] = x + f

    return kernel


def _split_heads_in(w, b, n_heads):
    # (D_in, H*dk) -> (H, D_in, dk);  (1, H*dk) -> (H, 1, dk)   [host-side]
    d_in, d_out = w.shape
    d_k = d_out // n_heads
    w_h = jnp.transpose(w.reshape(d_in, n_heads, d_k), (1, 0, 2))
    b_h = jnp.transpose(b.reshape(1, n_heads, d_k), (1, 0, 2))
    return w_h, b_h


def _split_heads_out(w, n_heads):
    # (H*dk, D_out) -> (H, dk, D_out)   [host-side]
    d_in, d_out = w.shape
    d_k = d_in // n_heads
    return w.reshape(n_heads, d_k, d_out)


_BLOCK_PARAM_NAMES = ("ln1_w", "ln1_b", "wq", "bq", "wk", "bk", "wv", "bv",
                      "wo", "bo", "ln2_w", "ln2_b", "w1", "b1", "w2", "b2")


def _stack_blocks(blocks, n_heads):
    """Host-side: split heads and stack all per-layer params along a leading axis."""
    per = []
    for blk in blocks:
        wq_h, bq_h = _split_heads_in(blk["wq"], blk["bq"], n_heads)
        wk_h, bk_h = _split_heads_in(blk["wk"], blk["bk"], n_heads)
        wv_h, bv_h = _split_heads_in(blk["wv"], blk["bv"], n_heads)
        wo_h = _split_heads_out(blk["wo"], n_heads)
        per.append(dict(ln1_w=blk["ln1_w"], ln1_b=blk["ln1_b"],
                        wq=wq_h, bq=bq_h, wk=wk_h, bk=bk_h, wv=wv_h, bv=bv_h,
                        wo=wo_h, bo=blk["bo"], ln2_w=blk["ln2_w"],
                        ln2_b=blk["ln2_b"], w1=blk["w1"], b1=blk["b1"],
                        w2=blk["w2"], b2=blk["b2"]))
    return {k: jnp.stack([p[k] for p in per], axis=0) for k in _BLOCK_PARAM_NAMES}


def pallas_transformer(x, stacked, n_heads, t_real):
    """x: (B, T_pad, D) -> (B, T_pad, D).  Grid = (batch, layer); the activation
    stays VMEM-resident across the layer axis."""
    B, T, D = x.shape
    L = stacked["wq"].shape[0]
    d_k = D // n_heads
    kernel = make_blocks_kernel(n_heads, d_k, T, t_real)

    args = [x] + [stacked[n] for n in _BLOCK_PARAM_NAMES]
    in_specs = [pl.BlockSpec((None, T, D), lambda b, l: (b, 0, 0))]
    for n in _BLOCK_PARAM_NAMES:
        a = stacked[n]
        blk_shape = (None,) + a.shape[1:]
        if a.ndim == 3:
            in_specs.append(pl.BlockSpec(blk_shape, lambda b, l: (l, 0, 0)))
        else:  # ndim == 4 (per-head weight / bias slabs)
            in_specs.append(pl.BlockSpec(blk_shape, lambda b, l: (l, 0, 0, 0)))

    return pl.pallas_call(
        kernel,
        grid=(B, L),
        in_specs=in_specs,
        out_specs=pl.BlockSpec((None, T, D), lambda b, l: (b, 0, 0)),
        out_shape=jax.ShapeDtypeStruct((B, T, D), jnp.float32),
        compiler_params=pltpu.CompilerParams(
            dimension_semantics=("parallel", "arbitrary"),
            vmem_limit_bytes=64 * 1024 * 1024),
    )(*args)


def final_kernel(x_ref, lnw, lnb, w_ref, b_ref, o_ref):
    h = _layernorm(x_ref[...], lnw[...], lnb[...])
    o_ref[...] = (jnp.dot(h.astype(w_ref.dtype), w_ref[...],
                          preferred_element_type=jnp.float32) + b_ref[...])


def pallas_final_head(cls_tok, lnw, lnb, w, b):
    B, D = cls_tok.shape
    O = w.shape[1]
    return pl.pallas_call(
        final_kernel,
        grid=(1,),
        in_specs=[
            pl.BlockSpec((B, D), lambda i: (0, 0)),
            pl.BlockSpec((1, D), lambda i: (0, 0)),
            pl.BlockSpec((1, D), lambda i: (0, 0)),
            pl.BlockSpec((D, O), lambda i: (0, 0)),
            pl.BlockSpec((1, O), lambda i: (0, 0)),
        ],
        out_specs=pl.BlockSpec((B, O), lambda i: (0, 0)),
        out_shape=jax.ShapeDtypeStruct((B, O), jnp.float32),
    )(cls_tok, lnw, lnb, w, b)


# ----------------------------------------------------------------------------
# glue (pure JAX): patch rearrange, cls concat, pos add, T padding, params
# ----------------------------------------------------------------------------
def extract_patches(x, patch):
    # einops: 'b c (h p1) (w p2) -> b (h w) (c p1 p2)'
    B, C, H, W = x.shape
    x = x.reshape(B, C, H // patch, patch, W // patch, patch)
    x = x.transpose(0, 2, 4, 1, 3, 5)                        # b h w c p1 p2
    return x.reshape(B, (H // patch) * (W // patch), C * patch * patch)


def vit_forward(x_img, params, cfg):
    B = x_img.shape[0]
    D = cfg["d_model"]
    patches = extract_patches(x_img, cfg["patch_size"])      # (B, N, C*p*p)
    N, Kp = patches.shape[1], patches.shape[2]

    # patch embedding (tiled Pallas linear, bf16 MXU)
    emb = pallas_linear(patches.reshape(B * N, Kp),
                        params["patch_w"], params["patch_b"]).reshape(B, N, D)

    cls = jnp.broadcast_to(params["cls_token"], (B, 1, D))
    x = jnp.concatenate([cls, emb], axis=1) + params["pos_emb"]   # (B, T, D)

    # pad T (sublane axis) to a multiple of 16 (bf16 sublane packing);
    # pad keys are masked inside the kernel, pad rows never feed real rows.
    t_real = N + 1
    t_pad = ((t_real + 15) // 16) * 16
    if t_pad != t_real:
        x = jnp.pad(x, ((0, 0), (0, t_pad - t_real), (0, 0)))

    stacked = _stack_blocks(params["blocks"], cfg["n_heads"])
    x = pallas_transformer(x, stacked, cfg["n_heads"], t_real)

    return pallas_final_head(x[:, 0], params["ln_f_w"], params["ln_f_b"],
                             params["head_w"], params["head_b"])


def init_linear(key, fan_in, fan_out):
    # PyTorch nn.Linear default init, weight stored as (in, out)
    kw, kb = jax.random.split(key)
    bound = 1.0 / math.sqrt(fan_in)
    w = jax.random.uniform(kw, (fan_in, fan_out), jnp.float32, -bound, bound)
    b = jax.random.uniform(kb, (1, fan_out), jnp.float32, -bound, bound)
    return w, b


def init_block(key, D, Hd):
    ks = jax.random.split(key, 6)
    wq, bq = init_linear(ks[0], D, D)
    wk, bk = init_linear(ks[1], D, D)
    wv, bv = init_linear(ks[2], D, D)
    wo, bo = init_linear(ks[3], D, D)
    w1, b1 = init_linear(ks[4], D, Hd)
    w2, b2 = init_linear(ks[5], Hd, D)
    return dict(ln1_w=jnp.ones((1, D)), ln1_b=jnp.zeros((1, D)),
                wq=wq, bq=bq, wk=wk, bk=bk, wv=wv, bv=bv, wo=wo, bo=bo,
                ln2_w=jnp.ones((1, D)), ln2_b=jnp.zeros((1, D)),
                w1=w1, b1=b1, w2=w2, b2=b2)


def init_params(key, cfg):
    D, Hd = cfg["d_model"], cfg["hidden_dim"]
    patch_dim = cfg["patch_size"] ** 2 * cfg["n_channels"]
    num_patches = (cfg["image_size"] // cfg["patch_size"]) ** 2
    ks = jax.random.split(key, 4 + cfg["n_layers"])
    patch_w, patch_b = init_linear(ks[0], patch_dim, D)
    pos_emb = jax.random.normal(ks[1], (1, num_patches + 1, D), jnp.float32)
    cls_token = jax.random.uniform(ks[2], (1, 1, D), jnp.float32)
    head_w, head_b = init_linear(ks[3], D, cfg["out_dim"])
    blocks = [init_block(ks[4 + i], D, Hd) for i in range(cfg["n_layers"])]
    return dict(patch_w=patch_w, patch_b=patch_b, pos_emb=pos_emb,
                cls_token=cls_token, ln_f_w=jnp.ones((1, D)),
                ln_f_b=jnp.zeros((1, D)), head_w=head_w, head_b=head_b,
                blocks=blocks)


def cast_matmul_weights_bf16(params):
    """Store all matmul weights in bf16 (biases / LN params stay f32)."""
    params = dict(params)
    params["patch_w"] = params["patch_w"].astype(jnp.bfloat16)
    params["head_w"] = params["head_w"].astype(jnp.bfloat16)
    blocks = []
    for blk in params["blocks"]:
        blk = dict(blk)
        for k in ("wq", "wk", "wv", "wo", "w1", "w2"):
            blk[k] = blk[k].astype(jnp.bfloat16)
        blocks.append(blk)
    params["blocks"] = blocks
    return params


# ----------------------------------------------------------------------------
# pure-JAX reference (mirrors the bf16 matmul-operand casts of the kernels)
# ----------------------------------------------------------------------------
def ref_attention_block(x, p, n_heads):
    B, T, D = x.shape
    dk = D // n_heads
    bf16, f32 = jnp.bfloat16, jnp.float32
    h = _layernorm(x, p["ln1_w"], p["ln1_b"])
    hb = h.astype(bf16)
    q = jnp.einsum("btd,de->bte", hb, p["wq"], preferred_element_type=f32) + p["bq"]
    k = jnp.einsum("btd,de->bte", hb, p["wk"], preferred_element_type=f32) + p["bk"]
    v = jnp.einsum("btd,de->bte", hb, p["wv"], preferred_element_type=f32) + p["bv"]
    q = q.reshape(B, T, n_heads, dk).transpose(0, 2, 1, 3)
    k = k.reshape(B, T, n_heads, dk).transpose(0, 2, 1, 3)
    v = v.reshape(B, T, n_heads, dk).transpose(0, 2, 1, 3)
    s = jnp.einsum("bhqd,bhkd->bhqk", q.astype(bf16), k.astype(bf16),
                   preferred_element_type=f32) / math.sqrt(dk)
    a = jax.nn.softmax(s, axis=-1)
    o = jnp.einsum("bhqk,bhkd->bhqd", a.astype(bf16), v.astype(bf16),
                   preferred_element_type=f32)
    o = o.transpose(0, 2, 1, 3).reshape(B, T, D)
    x = x + jnp.einsum("btd,de->bte", o.astype(bf16), p["wo"],
                       preferred_element_type=f32) + p["bo"]
    h2 = _layernorm(x, p["ln2_w"], p["ln2_b"])
    f = jnp.einsum("btd,dh->bth", h2.astype(bf16), p["w1"],
                   preferred_element_type=f32) + p["b1"]
    f = jax.nn.gelu(f, approximate=False)
    f = jnp.einsum("bth,hd->btd", f.astype(bf16), p["w2"],
                   preferred_element_type=f32) + p["b2"]
    return x + f


def ref_forward(x_img, params, cfg):
    B = x_img.shape[0]
    bf16, f32 = jnp.bfloat16, jnp.float32
    patches = extract_patches(x_img, cfg["patch_size"])
    emb = jnp.einsum("bnk,kd->bnd", patches.astype(bf16), params["patch_w"],
                     preferred_element_type=f32) + params["patch_b"]
    cls = jnp.broadcast_to(params["cls_token"], (B, 1, cfg["d_model"]))
    x = jnp.concatenate([cls, emb], axis=1) + params["pos_emb"]
    for blk in params["blocks"]:
        x = ref_attention_block(x, blk, cfg["n_heads"])
    h = _layernorm(x[:, 0], params["ln_f_w"], params["ln_f_b"])
    return jnp.einsum("bd,do->bo", h.astype(bf16), params["head_w"],
                      preferred_element_type=f32) + params["head_b"]


# ----------------------------------------------------------------------------
if __name__ == "__main__":
    cfg = dict(image_size=16, patch_size=4, n_channels=4, d_model=128,
               n_heads=4, hidden_dim=256, n_layers=2, out_dim=10)

    key = jax.random.PRNGKey(0)
    k_params, k_x = jax.random.split(key)
    params = cast_matmul_weights_bf16(init_params(k_params, cfg))
    x = jax.random.normal(
        k_x, (2, cfg["n_channels"], cfg["image_size"], cfg["image_size"]),
        jnp.float32)

    out = vit_forward(x, params, cfg)
    out = jax.block_until_ready(out)

    ref = ref_forward(x, params, cfg)
    assert out.shape == (2, cfg["out_dim"])
    assert bool(jnp.all(jnp.isfinite(out)))
    # tolerance accounts for the approximate EUP reciprocal in the in-kernel
    # softmax and bf16 rounding of MXU operands (reference mirrors the casts)
    err = float(jnp.max(jnp.abs(out - ref)))
    assert bool(jnp.allclose(out, ref, atol=1e-2, rtol=1e-2)), f"max err = {err}"
    print("KERNEL_OK")
</pallas_src>

<mosaic_0001>
module attributes {stable_mosaic.version = 11 : i64} {
  func.func @linear_kernel(%arg0: i32, %arg1: memref<32x64xf32, #tpu.memory_space<vmem>>, %arg2: memref<64x128xbf16, #tpu.memory_space<vmem>>, %arg3: memref<1x128xf32, #tpu.memory_space<vmem>>, %arg4: memref<32x128xf32, #tpu.memory_space<vmem>>) attributes {dimension_semantics = [#tpu.dimension_semantics<parallel>], iteration_bounds = array<i64: 1>, scalar_prefetch = 0 : i64, scratch_operands = 0 : i64, tpu.core_type = #tpu.core_type<tc>, window_params = [{transform_indices = @transform_0, window_bounds = array<i64: 32, 64>}, {pipeline_mode = #tpu.pipeline_mode<synchronous>, transform_indices = @transform_1, window_bounds = array<i64: 64, 128>}, {pipeline_mode = #tpu.pipeline_mode<synchronous>, transform_indices = @transform_2, window_bounds = array<i64: 1, 128>}, {transform_indices = @transform_3, window_bounds = array<i64: 32, 128>}]} {
    %c0 = arith.constant 0 : index
    %c0_0 = arith.constant 0 : index
    %0 = vector.load %arg1[%c0, %c0_0] : memref<32x64xf32, #tpu.memory_space<vmem>>, vector<32x64xf32>
    %1 = arith.truncf %0 : vector<32x64xf32> to vector<32x64xbf16>
    %c0_1 = arith.constant 0 : index
    %c0_2 = arith.constant 0 : index
    %2 = vector.load %arg2[%c0_1, %c0_2] : memref<64x128xbf16, #tpu.memory_space<vmem>>, vector<64x128xbf16>
    %cst = arith.constant dense<0.000000e+00> : vector<32x128xf32>
    %3 = tpu.matmul %1, %2, %cst {dimension_numbers = #tpu.dot_dimension_numbers<[1], [0], [0], [1], [0, 0, 1, 1], [], []>} : vector<32x64xbf16>, vector<64x128xbf16>, vector<32x128xf32> -> vector<32x128xf32>
    %c0_3 = arith.constant 0 : index
    %c0_4 = arith.constant 0 : index
    %4 = vector.load %arg3[%c0_3, %c0_4] : memref<1x128xf32, #tpu.memory_space<vmem>>, vector<1x128xf32>
    %5 = vector.broadcast %4 : vector<1x128xf32> to vector<32x128xf32>
    %6 = arith.addf %3, %5 : vector<32x128xf32>
    %c0_5 = arith.constant 0 : index
    %c0_6 = arith.constant 0 : index
    %7 = vector.load %arg4[%c0_5, %c0_6] : memref<32x128xf32, #tpu.memory_space<vmem>>, vector<32x128xf32>
    tpu.vector_store %arg4[%c0_5, %c0_6], %6 {strides = array<i32>} : memref<32x128xf32, #tpu.memory_space<vmem>>, vector<32x128xf32>,
    return
  }
  func.func @transform_0(%arg0: i32) -> (i32, i32) {
    %c0_i32 = arith.constant 0 : i32
    %c0_i32_0 = arith.constant 0 : i32
    return %arg0, %c0_i32 : i32, i32
  }
  func.func @transform_1(%arg0: i32) -> (i32, i32) {
    %c0_i32 = arith.constant 0 : i32
    %c0_i32_0 = arith.constant 0 : i32
    %c0_i32_1 = arith.constant 0 : i32
    return %c0_i32, %c0_i32_0 : i32, i32
  }
  func.func @transform_2(%arg0: i32) -> (i32, i32) {
    %c0_i32 = arith.constant 0 : i32
    %c0_i32_0 = arith.constant 0 : i32
    %c0_i32_1 = arith.constant 0 : i32
    return %c0_i32, %c0_i32_0 : i32, i32
  }
  func.func @transform_3(%arg0: i32) -> (i32, i32) {
    %c0_i32 = arith.constant 0 : i32
    %c0_i32_0 = arith.constant 0 : i32
    return %arg0, %c0_i32 : i32, i32
  }
}

</mosaic_0001>

<bundles_post_ra>
// kernel: tpu_custom_call.1
= control target key start
LH: loop header
LB: loop body
LE: loop exit
PB: predicated region body
PF: predicated region fallthrough
CT: control target
= control target key end

     0   :  { %8 = vsyncpa [#allocation3], 0  ;;  %s314_s0 = inlined_call_operand.hbm [shape: f32[32,64], index: 0, kind: input, shape index: {}]   ;;  %s315_s1 = inlined_call_operand.hbm [shape: bf16[64,128], index: 1, kind: input, shape index: {}]   ;;  %s316_s2 = inlined_call_operand.vmem [shape: f32[1,128], index: 2, kind: input, shape index: {}]   ;;  %s317_s3 = inlined_call_operand.hbm [shape: f32[32,128], index: 3, kind: output, shape index: {}]  }
   0x1   :  { %9 = vsyncpa [#allocation6], 0 }
   0x2   :  { %10 = vsyncpa [#allocation4], 0  ;;  %s269_s12 = smov [#allocation2]  }
   0x3   :  { %s16_s13 = sshll.u32 %s269_s12, 4  ;;  %s17_s13 = int_to_ptr.vmem [resolvable:$true] %s16_s13 }
   0x4   :  { %s211_s14 = scalar_lea.vmem %s17_s13, 512  ;;  %p216_p1 = scmp.lt.s32.totalorder %s17_s13, %s17_s13 }
   0x5   :  { %p212_p0 = scmp.ne.s32.totalorder %s17_s13, %s211_s14  ;;  %p217_p2 = scmp.lt.s32.totalorder %s211_s14, %s211_s14 }
   0x7   :  { %p218_p3 = por %p217_p2, %p216_p1 }
   0x9   :  { %p219_p4 = pnand %p218_p3, %p212_p0 }
   0xb   :  { %222 = shalt.err (!%p219_p4)
}
   0xc   :  { %s270_s15 = smov 128   ;;  %s271_s16 = smov 8  }
   0xd   :  { %22 = dma.hbm_to_vmem [thread:$0]  %s314_s0, 512, %s17_s13, [#allocation3], %s270_s15, %s270_s15, %s271_s16  }
   0xe   :  { %s272_s19 = smov [#allocation5]  }
   0xf   :  { %s28_s20 = sshll.u32 %s272_s19, 4  ;;  %s29_s20 = int_to_ptr.vmem [resolvable:$true] %s28_s20 }
  0x10   :  { %s231_s21 = scalar_lea.vmem %s29_s20, 512  ;;  %p236_p6 = scmp.lt.s32.totalorder %s29_s20, %s29_s20 }
  0x11   :  { %p232_p5 = scmp.ne.s32.totalorder %s29_s20, %s231_s21  ;;  %p237_p7 = scmp.lt.s32.totalorder %s231_s21, %s231_s21 }
  0x13   :  { %p238_p8 = por %p237_p7, %p236_p6 }
  0x15   :  { %p239_p9 = pnand %p238_p8, %p232_p5 }
  0x17   :  { %242 = shalt.err (!%p239_p9)
}
  0x18   :  { %s273_s22 = smov 64   ;;  %s274_s23 = smov 4  }
  0x19   :  { %34 = dma.hbm_to_vmem [thread:$0]  %s315_s1, 512, %s29_s20, [#allocation6], %s273_s22, %s273_s22, %s274_s23  }
  0x1a   :  { %263 = dma.done.wait [#allocation3], 512  }
  0x1b   :  { %264 = vsyncadd [#allocation3], 4294966784 }
  0x1c   :  { %265 = dma.done.wait [#allocation6], 512  }
  0x1d   :  { %266 = vsyncadd [#allocation6], 4294966784  ;;  %v199_v0 = vld [vmem:[#allocation5 + $0x18] sm:$0xff]   ;;  %v200_v1 = vld [vmem:[#allocation5 + $0x10] sm:$0xff]   ;;  %vm89_vm0 = vcmask 523264   ;;  %s275_s26 = smov [#allocation7]  }
  0x1e   :  { %180 = vmatprep.subr.bf16.mxu0 %v199_v0  ;;  %v201_v2 = vld [vmem:[#allocation5 + $0x8] sm:$0xff]   ;;  %v44_v3 = vld [vmem:[#allocation2] sm:$0xff]  ;;  %v46_v7 = vld [vmem:[#allocation2 + $0x10] sm:$0xff]  ;;  %s154_s27 = sshll.u32 %s275_s26, 4  ;;  %s155_s27 = int_to_ptr.vmem [resolvable:$true] %s154_s27 }
  0x1f   :  { %181 = vmatpush3.bf16.msra.mxu0 %v199_v0  ;;  %v45_v4 = vld [vmem:[#allocation2 + $0x8] sm:$0xff]  ;;  %v202_v6 = vld [vmem:[#allocation5] sm:$0xff]   ;;  %v47_v8 = vld [vmem:[#allocation2 + $0x18] sm:$0xff]  ;;  %s243_s28 = scalar_lea.vmem %s155_s27, 512  ;;  %p248_p11 = scmp.lt.s32.totalorder %s155_s27, %s155_s27 }
  0x20   :  { %182 = vmatprep.subr.bf16.mxu0 %v200_v1  ;;  %v48_v5 = vpack.c.bf16 %v45_v4, %v44_v3  ;;  %v49_v9 = vpack.c.bf16 %v47_v8, %v46_v7  ;;  %v167_v10 = vld [vmem:[%s316_s2] ss:$0 sm:$0xff]  ;;  %p244_p10 = scmp.ne.s32.totalorder %s155_s27, %s243_s28  ;;  %p249_p12 = scmp.lt.s32.totalorder %s243_s28, %s243_s28 }
  0x22   :  { %188 = vmatprep.mubr.msk.bf16.mxu0 %vm89_vm0, %v48_v5  ;;  %p250_p13 = por %p249_p12, %p248_p11 }
  0x23   :  { %183 = vmatpush3.bf16.msra.mxu0 %v200_v1 }
  0x24   :  { %184 = vmatprep.subr.bf16.mxu0 %v201_v2  ;;  %p251_p0 = pnand %p250_p13, %p244_p10 }
  0x27   :  { %185 = vmatpush3.bf16.msra.mxu0 %v201_v2 }
  0x28   :  { %186 = vmatprep.subr.bf16.mxu0 %v202_v6 }
  0x2b   :  { %187 = vmatpush3.bf16.msra.mxu0 %v202_v6 }
  0x2e   :  { %189 = vmatmul.mubr.msk.bf16.vlgmr.msra.gmra.mxu0 %vm89_vm0, %v49_v9 }
  0xee   :  { %v190_v11 = vpop.f32.mrf.mxu0 }
  0xef   :  { %v139_v12 = vadd.f32 %v190_v11, %v167_v10 }
  0xf0   :  { %v130_v13 = vpop.f32.mrf.mxu0 }
  0xf1   :  { %147 = vst [vmem:[#allocation7 + $0x10] sm:$0xff] %v139_v12  ;;  %v131_v14 = vadd.f32 %v167_v10, %v130_v13 }
  0xf2   :  { %v191_v15 = vpop.f32.mrf.mxu0 }
  0xf3   :  { %145 = vst [vmem:[#allocation7] sm:$0xff] %v131_v14  ;;  %v142_v16 = vadd.f32 %v191_v15, %v167_v10 }
  0xf4   :  { %v133_v17 = vpop.f32.mrf.mxu0 }
  0xf5   :  { %148 = vst [vmem:[#allocation7 + $0x18] sm:$0xff] %v142_v16  ;;  %v134_v18 = vadd.f32 %v167_v10, %v133_v17 }
  0xf7   :  { %146 = vst [vmem:[#allocation7 + $0x8] sm:$0xff] %v134_v18 }
  0xf8   :  { %254 = shalt.err (!%p251_p0)
}
  0xf9   :  { %160 = dma.vmem_to_hbm [thread:$0]  %s155_s27, 512, %s317_s3, [#allocation4], %s270_s15, %s270_s15, %s271_s16  }
  0xfa   :  { %267 = dma.done.wait [#allocation4], 512  }
  0xfb   :  { %268 = vsyncadd [#allocation4], 4294966784 }
  0xfc   :  { %164 = vsyncpa [#allocation3], 1 }
  0xfd   :  { %165 = vsyncpa [#allocation6], 1 }
  0xfe   :  { %166 = vsyncpa [#allocation4], 1 }

</bundles_post_ra>
